<compile_context>
chip_gen: v7x
topology: tpu7x:2x2x1
jax: 0.10.0
libtpu: 0.0.40
codegen_flags: <defaults>
</compile_context>

<pallas_src>
import jax
import jax.numpy as jnp
from jax.experimental import pallas as pl
from jax.experimental.pallas import tpu as pltpu

MAX_TB = 2048       # max batch-tile rows
OUT_PAD = 128       # padded lane width for layer-4 weights/bias (MXU friendly)
SPLIT_THRESHOLD = 256  # batches above this are split into >=2 tiles (v7x megacore)


def _round_up(n, m):
    return ((n + m - 1) // m) * m


def _mlp_kernel(x_ref, w1r0_ref, w1r1_ref, b1_ref,
                w2_ref, b2_ref, w3_ref, b3_ref, w4_ref, b4_ref, o_ref):
    """Fused 4-layer MLP forward for one batch tile.

    x_ref : (TB, 2)    both input features in one block
    w1r0/1: (1, 128)   rows of W1 (layer 1 runs on the VPU, K=2), f32
    w2    : (128,128) bf16, w3 : (128,64) bf16, w4 : (64,128) bf16 (cols 3.. zero)
    b*    : (1, out)   f32 (b4 padded to 128)
    o_ref : (3, TB)    lane-dense transposed output tile (3 real features)
    """
    bf16 = jnp.bfloat16

    # ---- Layer 1 on the VPU (f32): h1 = x0*W1[0] + x1*W1[1] + b1
    x0 = x_ref[:, 0:1]                                          # (TB, 1)
    x1 = x_ref[:, 1:2]                                          # (TB, 1)
    h1 = x0 * w1r0_ref[...] + x1 * w1r1_ref[...] + b1_ref[...]  # (TB, 128)
    h1 = jnp.maximum(h1, 0.0)

    # ---- Layers 2-4 on the MXU: bf16 inputs, f32 accumulation.
    h2 = jnp.dot(h1.astype(bf16), w2_ref[...],
                 preferred_element_type=jnp.float32) + b2_ref[...]
    h2 = jnp.maximum(h2, 0.0)                                   # (TB, 128)

    h3 = jnp.dot(h2.astype(bf16), w3_ref[...],
                 preferred_element_type=jnp.float32) + b3_ref[...]
    h3 = jnp.maximum(h3, 0.0)                                   # (TB, 64)

    y = jnp.dot(h3.astype(bf16), w4_ref[...],
                preferred_element_type=jnp.float32) + b4_ref[...]  # (TB, 128)

    # Lane-dense store: transpose the full (TB,128) tile on the (idle) XLU and
    # keep only the 3 real output rows -> full-lane vst instead of vst.msk.
    o_ref[...] = y.T[:3, :]                                     # (3, TB)


def prepare_params(params):
    """One-time layout prep (kept OUT of the per-call path):
       - split W1 into two (1,128) f32 row blocks for the VPU layer-1 path
       - reshape biases to (1, out), keep f32
       - zero-pad W4 / b4 output 3 -> 128; cast W2/W3/W4 to bf16 for the MXU."""
    (w1, b1), (w2, b2), (w3, b3), (w4, b4) = params
    f32, bf16 = jnp.float32, jnp.bfloat16
    w1 = w1.astype(f32)
    w4_pad = jnp.zeros((64, OUT_PAD), f32).at[:, :3].set(w4.astype(f32))
    b4_pad = jnp.zeros((1, OUT_PAD), f32).at[:, :3].set(b4.astype(f32).reshape(1, 3))
    return (w1[0:1, :], w1[1:2, :], b1.astype(f32).reshape(1, 128),
            w2.astype(bf16), b2.astype(f32).reshape(1, 128),
            w3.astype(bf16), b3.astype(f32).reshape(1, 64),
            w4_pad.astype(bf16), b4_pad)


@jax.jit
def mlp_forward(x, prepared):
    """x: (B, 2) float32 -> (B, 3) float32."""
    w1r0, w1r1, b1, w2, b2, w3, b3, w4p, b4p = prepared
    B = x.shape[0]

    # Batch tiling: single tile for small batches; for larger batches keep
    # n_tiles >= 2 (so v7x's two TensorCores both get work via the "parallel"
    # grid axis) with tb a multiple of 128 (lane-dense output blocks).
    b8 = _round_up(B, 8)
    if b8 <= SPLIT_THRESHOLD:
        tb = b8                                   # one tile; block == full array
    else:
        tb = min(MAX_TB, _round_up(pl.cdiv(B, 2), 128))
    b_pad = _round_up(B, tb)
    n_tiles = b_pad // tb

    x_in = x.astype(jnp.float32)
    if b_pad != B:
        x_in = jnp.pad(x_in, ((0, b_pad - B), (0, 0)))

    full = lambda shape: pl.BlockSpec(shape, lambda i: (0, 0))

    out_t = pl.pallas_call(
        _mlp_kernel,
        out_shape=jax.ShapeDtypeStruct((3, b_pad), jnp.float32),
        grid=(n_tiles,),
        in_specs=[
            pl.BlockSpec((tb, 2), lambda i: (i, 0)),         # x (both features)
            full((1, 128)), full((1, 128)), full((1, 128)),  # W1 row0, row1, b1
            full((128, 128)), full((1, 128)),                # W2 (bf16), b2
            full((128, 64)),  full((1, 64)),                 # W3 (bf16), b3
            full((64, OUT_PAD)), full((1, OUT_PAD)),         # W4 (bf16, padded), b4
        ],
        out_specs=pl.BlockSpec((3, tb), lambda i: (0, i)),   # lane-dense output slab
        compiler_params=pltpu.CompilerParams(
            dimension_semantics=("parallel",)),
    )(x_in, w1r0, w1r1, b1, w2, b2, w3, b3, w4p, b4p)

    return out_t.T[:B]                                        # (B, 3)


def init_params(key):
    """Deterministic init matching the PyTorch layer shapes (in, out) + bias."""
    shapes = [(2, 128), (128, 128), (128, 64), (64, 3)]
    params = []
    for i, (fan_in, fan_out) in enumerate(shapes):
        kw, kb = jax.random.split(jax.random.fold_in(key, i))
        bound = 1.0 / (fan_in ** 0.5)   # PyTorch nn.Linear default (uniform)
        w = jax.random.uniform(kw, (fan_in, fan_out), jnp.float32, -bound, bound)
        b = jax.random.uniform(kb, (fan_out,), jnp.float32, -bound, bound)
        params.append((w, b))
    return params


def _ref_forward(x, params):
    h = x
    for i, (w, b) in enumerate(params):
        h = h @ w + b
        if i < len(params) - 1:
            h = jnp.maximum(h, 0.0)
    return h


if __name__ == "__main__":
    key = jax.random.PRNGKey(0)
    params = init_params(key)
    prepared = prepare_params(params)

    # bf16 MXU inputs with f32 accumulation: tolerance loosened vs pure-f32.
    ATOL = RTOL = 2e-2

    # Shot start points (x, y): small deterministic batch (single-tile path).
    x = jax.random.normal(jax.random.fold_in(key, 100), (8, 2), jnp.float32)
    out = mlp_forward(x, prepared)
    jax.block_until_ready(out)
    ref = _ref_forward(x, params)
    assert out.shape == (8, 3), out.shape
    assert jnp.allclose(out, ref, atol=ATOL, rtol=RTOL), "mismatch vs reference (B=8)"

    # Larger batch: exercises the multi-tile grid (n_tiles>=2, tb mult of 128),
    # batch padding and the transposed lane-dense output path.
    x_big = jax.random.normal(jax.random.fold_in(key, 200), (1000, 2), jnp.float32)
    out_big = mlp_forward(x_big, prepared)
    jax.block_until_ready(out_big)
    ref_big = _ref_forward(x_big, params)
    assert out_big.shape == (1000, 3), out_big.shape
    assert jnp.allclose(out_big, ref_big, atol=ATOL, rtol=RTOL), "mismatch (B=1000)"

    print("KERNEL_OK")
</pallas_src>

<mosaic_0001>
module attributes {stable_mosaic.version = 11 : i64} {
  func.func @_mlp_kernel(%arg0: i32, %arg1: memref<8x2xf32, #tpu.memory_space<vmem>>, %arg2: memref<1x128xf32, #tpu.memory_space<vmem>>, %arg3: memref<1x128xf32, #tpu.memory_space<vmem>>, %arg4: memref<1x128xf32, #tpu.memory_space<vmem>>, %arg5: memref<128x128xbf16, #tpu.memory_space<vmem>>, %arg6: memref<1x128xf32, #tpu.memory_space<vmem>>, %arg7: memref<128x64xbf16, #tpu.memory_space<vmem>>, %arg8: memref<1x64xf32, #tpu.memory_space<vmem>>, %arg9: memref<64x128xbf16, #tpu.memory_space<vmem>>, %arg10: memref<1x128xf32, #tpu.memory_space<vmem>>, %arg11: memref<3x8xf32, #tpu.memory_space<vmem>>) attributes {dimension_semantics = [#tpu.dimension_semantics<parallel>], iteration_bounds = array<i64: 1>, scalar_prefetch = 0 : i64, scratch_operands = 0 : i64, tpu.core_type = #tpu.core_type<tc>, window_params = [{transform_indices = @transform_0, window_bounds = array<i64: 8, 2>}, {pipeline_mode = #tpu.pipeline_mode<synchronous>, transform_indices = @transform_1, window_bounds = array<i64: 1, 128>}, {pipeline_mode = #tpu.pipeline_mode<synchronous>, transform_indices = @transform_2, window_bounds = array<i64: 1, 128>}, {pipeline_mode = #tpu.pipeline_mode<synchronous>, transform_indices = @transform_3, window_bounds = array<i64: 1, 128>}, {pipeline_mode = #tpu.pipeline_mode<synchronous>, transform_indices = @transform_4, window_bounds = array<i64: 128, 128>}, {pipeline_mode = #tpu.pipeline_mode<synchronous>, transform_indices = @transform_5, window_bounds = array<i64: 1, 128>}, {pipeline_mode = #tpu.pipeline_mode<synchronous>, transform_indices = @transform_6, window_bounds = array<i64: 128, 64>}, {pipeline_mode = #tpu.pipeline_mode<synchronous>, transform_indices = @transform_7, window_bounds = array<i64: 1, 64>}, {pipeline_mode = #tpu.pipeline_mode<synchronous>, transform_indices = @transform_8, window_bounds = array<i64: 64, 128>}, {pipeline_mode = #tpu.pipeline_mode<synchronous>, transform_indices = @transform_9, window_bounds = array<i64: 1, 128>}, {transform_indices = @transform_10, window_bounds = array<i64: 3, 8>}]} {
    %c0 = arith.constant 0 : index
    %c0_0 = arith.constant 0 : index
    %0 = vector.load %arg1[%c0, %c0_0] : memref<8x2xf32, #tpu.memory_space<vmem>>, vector<8x1xf32>
    %c0_1 = arith.constant 0 : index
    %c1 = arith.constant 1 : index
    %1 = vector.load %arg1[%c0_1, %c1] : memref<8x2xf32, #tpu.memory_space<vmem>>, vector<8x1xf32>
    %c0_2 = arith.constant 0 : index
    %c0_3 = arith.constant 0 : index
    %2 = vector.load %arg2[%c0_2, %c0_3] : memref<1x128xf32, #tpu.memory_space<vmem>>, vector<1x128xf32>
    %3 = vector.broadcast %0 : vector<8x1xf32> to vector<8x128xf32>
    %4 = vector.broadcast %2 : vector<1x128xf32> to vector<8x128xf32>
    %5 = arith.mulf %3, %4 : vector<8x128xf32>
    %c0_4 = arith.constant 0 : index
    %c0_5 = arith.constant 0 : index
    %6 = vector.load %arg3[%c0_4, %c0_5] : memref<1x128xf32, #tpu.memory_space<vmem>>, vector<1x128xf32>
    %7 = vector.broadcast %1 : vector<8x1xf32> to vector<8x128xf32>
    %8 = vector.broadcast %6 : vector<1x128xf32> to vector<8x128xf32>
    %9 = arith.mulf %7, %8 : vector<8x128xf32>
    %10 = arith.addf %5, %9 : vector<8x128xf32>
    %c0_6 = arith.constant 0 : index
    %c0_7 = arith.constant 0 : index
    %11 = vector.load %arg4[%c0_6, %c0_7] : memref<1x128xf32, #tpu.memory_space<vmem>>, vector<1x128xf32>
    %12 = vector.broadcast %11 : vector<1x128xf32> to vector<8x128xf32>
    %13 = arith.addf %10, %12 : vector<8x128xf32>
    %cst = arith.constant 0.000000e+00 : f32
    %14 = vector.broadcast %cst : f32 to vector<8x128xf32>
    %15 = arith.maximumf %13, %14 : vector<8x128xf32>
    %16 = arith.truncf %15 : vector<8x128xf32> to vector<8x128xbf16>
    %c0_8 = arith.constant 0 : index
    %c0_9 = arith.constant 0 : index
    %17 = vector.load %arg5[%c0_8, %c0_9] : memref<128x128xbf16, #tpu.memory_space<vmem>>, vector<128x128xbf16>
    %cst_10 = arith.constant dense<0.000000e+00> : vector<8x128xf32>
    %18 = tpu.matmul %16, %17, %cst_10 {dimension_numbers = #tpu.dot_dimension_numbers<[1], [0], [0], [1], [0, 0, 1, 1], [], []>} : vector<8x128xbf16>, vector<128x128xbf16>, vector<8x128xf32> -> vector<8x128xf32>
    %c0_11 = arith.constant 0 : index
    %c0_12 = arith.constant 0 : index
    %19 = vector.load %arg6[%c0_11, %c0_12] : memref<1x128xf32, #tpu.memory_space<vmem>>, vector<1x128xf32>
    %20 = vector.broadcast %19 : vector<1x128xf32> to vector<8x128xf32>
    %21 = arith.addf %18, %20 : vector<8x128xf32>
    %cst_13 = arith.constant 0.000000e+00 : f32
    %22 = vector.broadcast %cst_13 : f32 to vector<8x128xf32>
    %23 = arith.maximumf %21, %22 : vector<8x128xf32>
    %24 = arith.truncf %23 : vector<8x128xf32> to vector<8x128xbf16>
    %c0_14 = arith.constant 0 : index
    %c0_15 = arith.constant 0 : index
    %25 = vector.load %arg7[%c0_14, %c0_15] : memref<128x64xbf16, #tpu.memory_space<vmem>>, vector<128x64xbf16>
    %cst_16 = arith.constant dense<0.000000e+00> : vector<8x64xf32>
    %26 = tpu.matmul %24, %25, %cst_16 {dimension_numbers = #tpu.dot_dimension_numbers<[1], [0], [0], [1], [0, 0, 1, 1], [], []>} : vector<8x128xbf16>, vector<128x64xbf16>, vector<8x64xf32> -> vector<8x64xf32>
    %c0_17 = arith.constant 0 : index
    %c0_18 = arith.constant 0 : index
    %27 = vector.load %arg8[%c0_17, %c0_18] : memref<1x64xf32, #tpu.memory_space<vmem>>, vector<1x64xf32>
    %28 = vector.broadcast %27 : vector<1x64xf32> to vector<8x64xf32>
    %29 = arith.addf %26, %28 : vector<8x64xf32>
    %cst_19 = arith.constant 0.000000e+00 : f32
    %30 = vector.broadcast %cst_19 : f32 to vector<8x64xf32>
    %31 = arith.maximumf %29, %30 : vector<8x64xf32>
    %32 = arith.truncf %31 : vector<8x64xf32> to vector<8x64xbf16>
    %c0_20 = arith.constant 0 : index
    %c0_21 = arith.constant 0 : index
    %33 = vector.load %arg9[%c0_20, %c0_21] : memref<64x128xbf16, #tpu.memory_space<vmem>>, vector<64x128xbf16>
    %cst_22 = arith.constant dense<0.000000e+00> : vector<8x128xf32>
    %34 = tpu.matmul %32, %33, %cst_22 {dimension_numbers = #tpu.dot_dimension_numbers<[1], [0], [0], [1], [0, 0, 1, 1], [], []>} : vector<8x64xbf16>, vector<64x128xbf16>, vector<8x128xf32> -> vector<8x128xf32>
    %c0_23 = arith.constant 0 : index
    %c0_24 = arith.constant 0 : index
    %35 = vector.load %arg10[%c0_23, %c0_24] : memref<1x128xf32, #tpu.memory_space<vmem>>, vector<1x128xf32>
    %36 = vector.broadcast %35 : vector<1x128xf32> to vector<8x128xf32>
    %37 = arith.addf %34, %36 : vector<8x128xf32>
    %38 = tpu.transpose %37, [1, 0] : vector<8x128xf32> -> vector<128x8xf32>
    %39 = vector.extract_strided_slice %38 {offsets = [0, 0], sizes = [3, 8], strides = [1, 1]} : vector<128x8xf32> to vector<3x8xf32>
    %c0_25 = arith.constant 0 : index
    %c0_26 = arith.constant 0 : index
    %40 = vector.load %arg11[%c0_25, %c0_26] : memref<3x8xf32, #tpu.memory_space<vmem>>, vector<3x8xf32>
    tpu.vector_store %arg11[%c0_25, %c0_26], %39 {strides = array<i32>} : memref<3x8xf32, #tpu.memory_space<vmem>>, vector<3x8xf32>,
    return
  }
  func.func @transform_0(%arg0: i32) -> (i32, i32) {
    %c0_i32 = arith.constant 0 : i32
    %c0_i32_0 = arith.constant 0 : i32
    return %arg0, %c0_i32 : i32, i32
  }
  func.func @transform_1(%arg0: i32) -> (i32, i32) {
    %c0_i32 = arith.constant 0 : i32
    %c0_i32_0 = arith.constant 0 : i32
    %c0_i32_1 = arith.constant 0 : i32
    return %c0_i32, %c0_i32_0 : i32, i32
  }
  func.func @transform_2(%arg0: i32) -> (i32, i32) {
    %c0_i32 = arith.constant 0 : i32
    %c0_i32_0 = arith.constant 0 : i32
    %c0_i32_1 = arith.constant 0 : i32
    return %c0_i32, %c0_i32_0 : i32, i32
  }
  func.func @transform_3(%arg0: i32) -> (i32, i32) {
    %c0_i32 = arith.constant 0 : i32
    %c0_i32_0 = arith.constant 0 : i32
    %c0_i32_1 = arith.constant 0 : i32
    return %c0_i32, %c0_i32_0 : i32, i32
  }
  func.func @transform_4(%arg0: i32) -> (i32, i32) {
    %c0_i32 = arith.constant 0 : i32
    %c0_i32_0 = arith.constant 0 : i32
    %c0_i32_1 = arith.constant 0 : i32
    return %c0_i32, %c0_i32_0 : i32, i32
  }
  func.func @transform_5(%arg0: i32) -> (i32, i32) {
    %c0_i32 = arith.constant 0 : i32
    %c0_i32_0 = arith.constant 0 : i32
    %c0_i32_1 = arith.constant 0 : i32
    return %c0_i32, %c0_i32_0 : i32, i32
  }
  func.func @transform_6(%arg0: i32) -> (i32, i32) {
    %c0_i32 = arith.constant 0 : i32
    %c0_i32_0 = arith.constant 0 : i32
    %c0_i32_1 = arith.constant 0 : i32
    return %c0_i32, %c0_i32_0 : i32, i32
  }
  func.func @transform_7(%arg0: i32) -> (i32, i32) {
    %c0_i32 = arith.constant 0 : i32
    %c0_i32_0 = arith.constant 0 : i32
    %c0_i32_1 = arith.constant 0 : i32
    return %c0_i32, %c0_i32_0 : i32, i32
  }
  func.func @transform_8(%arg0: i32) -> (i32, i32) {
    %c0_i32 = arith.constant 0 : i32
    %c0_i32_0 = arith.constant 0 : i32
    %c0_i32_1 = arith.constant 0 : i32
    return %c0_i32, %c0_i32_0 : i32, i32
  }
  func.func @transform_9(%arg0: i32) -> (i32, i32) {
    %c0_i32 = arith.constant 0 : i32
    %c0_i32_0 = arith.constant 0 : i32
    %c0_i32_1 = arith.constant 0 : i32
    return %c0_i32, %c0_i32_0 : i32, i32
  }
  func.func @transform_10(%arg0: i32) -> (i32, i32) {
    %c0_i32 = arith.constant 0 : i32
    %c0_i32_0 = arith.constant 0 : i32
    return %c0_i32, %arg0 : i32, i32
  }
}

</mosaic_0001>

<bundles_post_ra>
// kernel: mlp_forward.1
= control target key start
LH: loop header
LB: loop body
LE: loop exit
PB: predicated region body
PF: predicated region fallthrough
CT: control target
= control target key end

     0   :  { %15 = vsyncpa [#allocation3], 0  ;;  %s951_s0 = inlined_call_operand.vmem [shape: f32[8,2], index: 0, kind: input, shape index: {}]   ;;  %s952_s1 = inlined_call_operand.hbm [shape: f32[1,128], index: 1, kind: input, shape index: {}]   ;;  %s953_s2 = inlined_call_operand.hbm [shape: f32[1,128], index: 2, kind: input, shape index: {}]   ;;  %s954_s3 = inlined_call_operand.hbm [shape: f32[1,128], index: 3, kind: input, shape index: {}]   ;;  %s955_s4 = inlined_call_operand.vmem [shape: bf16[128,128], index: 4, kind: input, shape index: {}]   ;;  %s956_s5 = inlined_call_operand.hbm [shape: f32[1,128], index: 5, kind: input, shape index: {}]   ;;  %s957_s6 = inlined_call_operand.vmem [shape: bf16[128,64], index: 6, kind: input, shape index: {}]   ;;  %s958_s7 = inlined_call_operand.vmem [shape: f32[1,64], index: 7, kind: input, shape index: {}]   ;;  %s959_s8 = inlined_call_operand.vmem [shape: bf16[64,128], index: 8, kind: input, shape index: {}]   ;;  %s960_s9 = inlined_call_operand.vmem [shape: f32[1,128], index: 9, kind: input, shape index: {}]   ;;  %s961_s10 = inlined_call_operand.hbm [shape: f32[3,8], index: 10, kind: output, shape index: {}]  }
   0x1   :  { %16 = vsyncpa [#allocation6], 0 }
   0x2   :  { %17 = vsyncpa [#allocation9], 0 }
   0x3   :  { %18 = vsyncpa [#allocation4], 0  ;;  %s732_s13 = smov [#allocation5]   ;;  %s733_s15 = smov [#allocation2]  }
   0x4   :  { %s37_s14 = sshll.u32 %s732_s13, 4  ;;  %s27_s16 = sshll.u32 %s733_s15, 4  ;;  %s38_s14 = int_to_ptr.vmem [resolvable:$true] %s37_s14  ;;  %s28_s16 = int_to_ptr.vmem [resolvable:$true] %s27_s16 }
   0x5   :  { %s614_s19 = scalar_lea.hbm %s953_s2, 16 }
   0x6   :  { %p615_p0 = scmp.ne.s32.totalorder %s953_s2, %s614_s19  ;;  %p618_p1 = scmp.lt.u32.totalorder %s614_s19, %s953_s2 }
   0x8   :  { %p620_p2 = pnand %p618_p1, %p615_p0 }
   0xa   :  { %623 = shalt.err (!%p620_p2)
}
   0xb   :  { %s624_s24 = scalar_lea.vmem %s38_s14, 16  ;;  %s628_s25 = scalar_lea.vmem %s38_s14, 32 }
   0xc   :  { %p625_p3 = scmp.ne.s32.totalorder %s38_s14, %s624_s24  ;;  %p629_p4 = scmp.lt.s32.totalorder %s38_s14, %s38_s14 }
   0xd   :  { %p630_p5 = scmp.lt.s32.totalorder %s628_s25, %s624_s24 }
   0xf   :  { %p631_p6 = por %p630_p5, %p629_p4 }
  0x11   :  { %p632_p7 = pnand %p631_p6, %p625_p3 }
  0x13   :  { %635 = shalt.err (!%p632_p7)
}
  0x14   :  { %40 = dma.hbm_to_vmem [thread:$0]  %s953_s2, 16, %s38_s14, [#allocation6]  }
  0x15   :  { %s636_s30 = scalar_lea.hbm %s952_s1, 16 }
  0x16   :  { %p637_p8 = scmp.ne.s32.totalorder %s952_s1, %s636_s30  ;;  %p640_p9 = scmp.lt.u32.totalorder %s636_s30, %s952_s1 }
  0x18   :  { %p642_p10 = pnand %p640_p9, %p637_p8 }
  0x1a   :  { %645 = shalt.err (!%p642_p10)
}
  0x1b   :  { %s646_s17 = scalar_lea.vmem %s28_s16, 16  ;;  %s650_s18 = scalar_lea.vmem %s28_s16, 32 }
  0x1c   :  { %p647_p11 = scmp.ne.s32.totalorder %s28_s16, %s646_s17  ;;  %p651_p12 = scmp.lt.s32.totalorder %s28_s16, %s28_s16 }
  0x1d   :  { %p652_p13 = scmp.lt.s32.totalorder %s650_s18, %s646_s17 }
  0x1f   :  { %p653_p0 = por %p652_p13, %p651_p12 }
  0x21   :  { %p654_p1 = pnand %p653_p0, %p647_p11 }
  0x23   :  { %657 = shalt.err (!%p654_p1)
}
  0x24   :  { %30 = dma.hbm_to_vmem [thread:$0]  %s952_s1, 16, %s28_s16, [#allocation3]  }
  0x25   :  { %s734_s19 = smov [#allocation7]   ;;  %s735_s21 = smov [#allocation8]  }
  0x26   :  { %s47_s20 = sshll.u32 %s734_s19, 4  ;;  %s59_s22 = sshll.u32 %s735_s21, 4  ;;  %s48_s20 = int_to_ptr.vmem [resolvable:$true] %s47_s20  ;;  %s60_s22 = int_to_ptr.vmem [resolvable:$true] %s59_s22 }
  0x27   :  { %s658_s25 = scalar_lea.hbm %s954_s3, 16 }
  0x28   :  { %p659_p2 = scmp.ne.s32.totalorder %s954_s3, %s658_s25  ;;  %p662_p3 = scmp.lt.u32.totalorder %s658_s25, %s954_s3 }
  0x2a   :  { %p664_p4 = pnand %p662_p3, %p659_p2 }
  0x2c   :  { %667 = shalt.err (!%p664_p4)
}
  0x2d   :  { %s668_s1 = scalar_lea.vmem %s48_s20, 16  ;;  %s672_s16 = scalar_lea.vmem %s48_s20, 32 }
  0x2e   :  { %p669_p5 = scmp.ne.s32.totalorder %s48_s20, %s668_s1  ;;  %p673_p6 = scmp.lt.s32.totalorder %s48_s20, %s48_s20 }
  0x2f   :  { %p674_p7 = scmp.lt.s32.totalorder %s672_s16, %s668_s1 }
  0x31   :  { %p675_p8 = por %p674_p7, %p673_p6 }
  0x33   :  { %p676_p9 = pnand %p675_p8, %p669_p5 }
  0x35   :  { %679 = shalt.err (!%p676_p9)
}
  0x36   :  { %50 = dma.hbm_to_vmem [thread:$0]  %s954_s3, 16, %s48_s20, [#allocation6]  }
  0x37   :  { %s680_s15 = scalar_lea.hbm %s956_s5, 16 }
  0x38   :  { %p681_p10 = scmp.ne.s32.totalorder %s956_s5, %s680_s15  ;;  %p684_p11 = scmp.lt.u32.totalorder %s680_s15, %s956_s5 }
  0x3a   :  { %p686_p12 = pnand %p684_p11, %p681_p10 }
  0x3c   :  { %689 = shalt.err (!%p686_p12)
}
  0x3d   :  { %s690_s19 = scalar_lea.vmem %s60_s22, 16  ;;  %s694_s21 = scalar_lea.vmem %s60_s22, 32 }
  0x3e   :  { %p691_p13 = scmp.ne.s32.totalorder %s60_s22, %s690_s19  ;;  %p695_p0 = scmp.lt.s32.totalorder %s60_s22, %s60_s22 }
  0x3f   :  { %p696_p1 = scmp.lt.s32.totalorder %s694_s21, %s690_s19 }
  0x41   :  { %p697_p2 = por %p696_p1, %p695_p0 }
  0x43   :  { %p698_p3 = pnand %p697_p2, %p691_p13 }
  0x45   :  { %701 = shalt.err (!%p698_p3)
}
  0x46   :  { %62 = dma.hbm_to_vmem [thread:$0]  %s956_s5, 16, %s60_s22, [#allocation9]  }
  0x47   :  { %724 = dma.done.wait [#allocation3], 16  }
  0x48   :  { %725 = vsyncadd [#allocation3], 4294967280 }
  0x49   :  { %726 = dma.done.wait [#allocation6], 32  }
  0x4a   :  { %727 = vsyncadd [#allocation6], 4294967264 }
  0x4b   :  { %728 = dma.done.wait [#allocation9], 16  }
  0x4c   :  { %729 = vsyncadd [#allocation9], 4294967280  ;;  %v736_v0 = vmov 0   ;;  %v737_v1 = vmov 0.0   ;;  %v84_v2 = vld [vmem:[%s951_s0] sm:$0xff]  ;;  %v595_v4 = vld [vmem:[%s955_s4 + $0x8] sm:$0xff]  }
  0x4d   :  { %592 = vset.pattern.permute.xlu0 %v736_v0  ;;  %531 = vmatprep.subr.bf16.mxu0 %v737_v1  ;;  %v594_v3 = vld [vmem:[%s955_s4] sm:$0xff]   ;;  %v738_v5 = vmov 1   ;;  %v596_v6 = vld [vmem:[%s955_s4 + $0x10] sm:$0xff]   ;;  %v597_v7 = vld [vmem:[%s955_s4 + $0x18] sm:$0xff]   ;;  %vm739_vm0 = vmmov 0   ;;  %vm386_vm1 = vcmask 523264  }
  0x4e   :  { %551 = vmatprep.subr.bf16.mxu1 %v737_v1  ;;  %88 = vperm.xlu0 %592, %v84_v2   ;;  %v598_v8 = vld [vmem:[%s955_s4 + $0x20] sm:$0xff]   ;;  %v603_v10 = vld [vmem:[%s957_s6 + $0x8] sm:$0xff]   ;;  %v604_v12 = vld [vmem:[%s957_s6 + $0x10] sm:$0xff]   ;;  %vm462_vm2 = vcmask 59392  }
  0x4f   :  { %532 = vmatpush3.bf16.msra.mxu0 %v594_v3  ;;  %547 = vmatprep.mubr.msk.bf16.mxu0 %vm739_vm0, %v737_v1  ;;  %v602_v9 = vld [vmem:[%s957_s6] sm:$0xff]   ;;  %v599_v11 = vld [vmem:[%s955_s4 + $0x28] sm:$0xff]   ;;  %v600_v13 = vld [vmem:[%s955_s4 + $0x30] sm:$0xff]  }
  0x50   :  { %533 = vmatprep.subr.bf16.mxu0 %v737_v1  ;;  %567 = vmatprep.mubr.msk.bf16.mxu1 %vm739_vm0, %v737_v1  ;;  %v605_v14 = vld [vmem:[%s957_s6 + $0x18] sm:$0xff]   ;;  %v606_v16 = vld [vmem:[%s957_s6 + $0x20] sm:$0xff]   ;;  %v607_v17 = vld [vmem:[%s957_s6 + $0x28] sm:$0xff]  }
  0x51   :  { %552 = vmatpush3.bf16.msra.mxu1 %v602_v9  ;;  %v601_v15 = vld [vmem:[%s955_s4 + $0x38] sm:$0xff]   ;;  %v481_v19 = vld [vmem:[#allocation2] ss:$0 sm:$0xff]  ;;  %v482_v20 = vld [vmem:[#allocation5] ss:$0 sm:$0xff] }
  0x52   :  { %593 = vset.pattern.permute.xlu0 %v738_v5  ;;  %553 = vmatprep.subr.bf16.mxu1 %v737_v1  ;;  %v483_v24 = vld [vmem:[#allocation7] ss:$0 sm:$0xff]  ;;  %v608_v29 = vld [vmem:[%s957_s6 + $0x30] sm:$0xff]   ;;  %v609_v30 = vld [vmem:[%s957_s6 + $0x38] sm:$0xff]  }
  0x53   :  { %100 = vperm.xlu0 %593, %v84_v2   ;;  %534 = vmatpush3.bf16.msra.mxu0 %v595_v4  ;;  %v610_v31 = vld [vmem:[%s959_s8] sm:$0xff]   ;;  %v611_v32 = vld [vmem:[%s959_s8 + $0x8] sm:$0xff]   ;;  %v612_v41 = vld [vmem:[%s959_s8 + $0x10] sm:$0xff]  }
  0x54   :  { %535 = vmatprep.subr.bf16.mxu0 %v737_v1  ;;  %v484_v33 = vld [vmem:[#allocation8] ss:$0 sm:$0xff]  ;;  %v613_v42 = vld [vmem:[%s959_s8 + $0x18] sm:$0xff]   ;;  %v493_v43 = vld [vmem:[%s958_s7] ss:$0 sm:$0xff]  ;;  %s740_s7 = smov [#allocation10]  }
  0x55   :  { %554 = vmatpush3.bf16.msra.mxu1 %v603_v10  ;;  %v502_v51 = vld [vmem:[%s960_s9] ss:$0 sm:$0xff]  ;;  %s470_s8 = sshll.u32 %s740_s7, 4  ;;  %s471_s8 = int_to_ptr.vmem [resolvable:$true] %s470_s8 }
  0x56   :  { %555 = vmatprep.subr.bf16.mxu1 %v737_v1  ;;  %s702_s2 = scalar_lea.vmem %s471_s8, 64  ;;  %p707_p5 = scmp.lt.s32.totalorder %s471_s8, %s471_s8 }
  0x57   :  { %536 = vmatpush3.bf16.msra.mxu0 %v596_v6  ;;  %p703_p4 = scmp.ne.s32.totalorder %s471_s8, %s702_s2  ;;  %p708_p6 = scmp.lt.s32.totalorder %s702_s2, %s702_s2 }
  0x58   :  { %537 = vmatprep.subr.bf16.mxu0 %v737_v1 }
  0x59   :  { %556 = vmatpush3.bf16.msra.mxu1 %v604_v12  ;;  %p709_p7 = por %p708_p6, %p707_p5 }
  0x5a   :  { %557 = vmatprep.subr.bf16.mxu1 %v737_v1 }
  0x5b   :  { %538 = vmatpush3.bf16.msra.mxu0 %v597_v7  ;;  %p710_p8 = pnand %p709_p7, %p703_p4 }
  0x5c   :  { %539 = vmatprep.subr.bf16.mxu0 %v737_v1 }
  0x5d   :  { %558 = vmatpush3.bf16.msra.mxu1 %v605_v14 }
  0x5e   :  { %559 = vmatprep.subr.bf16.mxu1 %v737_v1 }
  0x5f   :  { %540 = vmatpush3.bf16.msra.mxu0 %v598_v8 }
  0x60   :  { %541 = vmatprep.subr.bf16.mxu0 %v737_v1 }
  0x61   :  { %560 = vmatpush3.bf16.msra.mxu1 %v606_v16 }
  0x62   :  { %561 = vmatprep.subr.bf16.mxu1 %v737_v1 }
  0x63   :  { %542 = vmatpush3.bf16.msra.mxu0 %v599_v11 }
  0x64   :  { %543 = vmatprep.subr.bf16.mxu0 %v737_v1 }
  0x65   :  { %562 = vmatpush3.bf16.msra.mxu1 %v607_v17 }
  0x66   :  { %563 = vmatprep.subr.bf16.mxu1 %v737_v1 }
  0x67   :  { %544 = vmatpush3.bf16.msra.mxu0 %v600_v13 }
  0x68   :  { %545 = vmatprep.subr.bf16.mxu0 %v737_v1 }
  0x69   :  { %564 = vmatpush3.bf16.msra.mxu1 %v608_v29 }
  0x6a   :  { %565 = vmatprep.subr.bf16.mxu1 %v737_v1 }
  0x6b   :  { %546 = vmatpush3.bf16.msra.mxu0 %v601_v15 }
  0x6c   :  { %571 = vmatprep.subr.bf16.mxu0 %v737_v1 }
  0x6d   :  { %566 = vmatpush3.bf16.msra.mxu1 %v609_v30 }
  0xcd   :  { %v89_v18 = vpop.permute.xlu0 %88 }
  0xce   :  { %v97_v22 = vmul.f32 %v481_v19, %v89_v18 }
  0xd2   :  { %v101_v21 = vpop.permute.xlu0 %100 }
  0xd3   :  { %v109_v23 = vmul.f32 %v482_v20, %v101_v21 }
  0xd5   :  { %v110_v25 = vadd.f32 %v109_v23, %v97_v22 }
  0xd7   :  { %v118_v26 = vadd.f32 %v483_v24, %v110_v25 }
  0xd9   :  { %v119_v27 = vmax.f32 %v118_v26, 0.0 }
  0xdb   :  { %v120_v28 = vpack.c.bf16 %v119_v27, %v119_v27 }
  0xdd   :  { %548 = vmatmul.mubr.bf16.vlgmr.msra.gmra.mrb[0].mxu0 %v120_v28 }
  0xde   :  { %579 = vmatprep.mubr.msk.bf16.mxu0 %vm739_vm0, %v737_v1  ;;  %572 = vmatpush3.bf16.msra.mxu0 %v610_v31 }
  0xdf   :  { %573 = vmatprep.subr.bf16.mxu0 %v737_v1 }
  0xe2   :  { %574 = vmatpush3.bf16.msra.mxu0 %v611_v32 }
  0xe3   :  { %575 = vmatprep.subr.bf16.mxu0 %v737_v1 }
  0xe6   :  { %576 = vmatpush3.bf16.msra.mxu0 %v612_v41 }
  0xe7   :  { %577 = vmatprep.subr.bf16.mxu0 %v737_v1 }
  0xea   :  { %578 = vmatpush3.bf16.msra.mxu0 %v613_v42 }
 0x1b0   :  { %v226_v34 = vpop.f32.mrb[0].mxu0 }
 0x1b1   :  { %v227_v35 = vadd.f32 %v484_v33, %v226_v34  ;;  %v549_v36 = vpop.f32.mrb[1].mxu0 }
 0x1b2   :  { %v229_v37 = vpop.f32.mrb[2].mxu0 }
 0x1b3   :  { %v232_v38 = vmax.f32 %v227_v35, 0.0  ;;  %v550_v39 = vpop.f32.mrb[3].mxu0 }
 0x1b5   :  { %v233_v40 = vpack.c.bf16 %v232_v38, %v232_v38 }
 0x1b7   :  { %568 = vmatmul.mubr.bf16.vlgmr.msra.gmra.mrb[0].mxu1 %v233_v40 }
 0x28a   :  { %v339_v44 = vpop.f32.mrb[0].mxu1 }
 0x28b   :  { %v340_v45 = vadd.f32 %v493_v43, %v339_v44  ;;  %v569_v46 = vpop.f32.mrb[1].mxu1 }
 0x28c   :  { %v342_v47 = vpop.f32.mrb[2].mxu1 }
 0x28d   :  { %v345_v48 = vmax.f32 %v340_v45, 0.0  ;;  %v570_v49 = vpop.f32.mrb[3].mxu1 }
 0x28f   :  { %v346_v50 = vpack.c.bf16 %v345_v48, %v345_v48 }
 0x291   :  { %580 = vmatmul.mubr.msk.bf16.vlgmr.msra.gmra.mrb[4].mxu0 %vm386_vm1, %v346_v50 }
 0x364   :  { %v424_v52 = vpop.f32.mrb[4].mxu0 }
 0x365   :  { %v581_v53 = vpop.f32.mrb[5].mxu0  ;;  %v425_v54 = vadd.f32 %v502_v51, %v424_v52 }
 0x366   :  { %v427_v55 = vpop.f32.mrb[6].mxu0 }
 0x367   :  { %430 = vxpose.xlu1.b32.start.end [1/1] (short) (narrow) %v425_v54, 8  ;;  %v582_v56 = vpop.f32.mrb[7].mxu0 }
 0x3e7   :  { %v446_v57 = vpop.trf.xlu1 }
 0x3e8   :  { %463 = vst.msk [vmem:[#allocation10] sm:$0x7] %vm462_vm2, %v446_v57 }
 0x3e9   :  { %713 = shalt.err (!%p710_p8)
}
 0x3ea   :  { %s714_s19 = scalar_lea.hbm %s961_s10, 64 }
 0x3eb   :  { %p715_p9 = scmp.ne.s32.totalorder %s961_s10, %s714_s19  ;;  %p718_p10 = scmp.lt.u32.totalorder %s714_s19, %s961_s10 }
 0x3ed   :  { %p720_p11 = pnand %p718_p10, %p715_p9 }
 0x3ef   :  { %723 = shalt.err (!%p720_p11)
}
 0x3f0   :  { %473 = dma.vmem_to_hbm [thread:$0]  %s471_s8, 64, %s961_s10, [#allocation4]  }
 0x3f1   :  { %730 = dma.done.wait [#allocation4], 64  }
 0x3f2   :  { %731 = vsyncadd [#allocation4], 4294967232 }
 0x3f3   :  { %477 = vsyncpa [#allocation3], 1 }
 0x3f4   :  { %478 = vsyncpa [#allocation6], 1 }
 0x3f5   :  { %479 = vsyncpa [#allocation9], 1 }
 0x3f6   :  { %480 = vsyncpa [#allocation4], 1 }

</bundles_post_ra>
